<compile_context>
chip_gen: v7x
topology: tpu7x:2x2x1
jax: 0.10.0
libtpu: 0.0.40
codegen_flags: <defaults>
</compile_context>

<pallas_src>
from functools import partial

import jax
import jax.numpy as jnp
from jax import lax
from jax.experimental import pallas as pl
from jax.experimental.pallas import tpu as pltpu


def _round_up(x, m):
    return ((x + m - 1) // m) * m


def _embnet_kernel(x_ref, w1_ref, b1_ref, w2_ref, b2_ref, o_ref):
    # x_ref: (TB, F_in) bf16   w1: (F_in, HID) bf16   b1: (1, HID) f32
    # w2:    (HID, D)   bf16   b2: (1, D)      f32    o:  (TB, D)  bf16
    x = x_ref[...]
    h = jnp.dot(x, w1_ref[...], preferred_element_type=jnp.float32)
    h = jnp.maximum(h + b1_ref[...], 0.0)                       # bias + ReLU (f32)
    e = jnp.dot(h.astype(w2_ref.dtype), w2_ref[...],
                preferred_element_type=jnp.float32) + b2_ref[...]
    # F.normalize(e, p=2, dim=1) == e / clamp_min(||e||_2, 1e-12).
    # rsqrt runs on the (otherwise idle) EUP slot; the divide becomes a multiply.
    sumsq = jnp.sum(e * e, axis=1, keepdims=True)
    inv = lax.rsqrt(jnp.maximum(sumsq, 1e-24))                  # 1e-24 == (1e-12)^2
    # D < 128 -> masked store; output is bf16 so it is ~2.5% of total bytes.
    o_ref[...] = (e * inv).astype(o_ref.dtype)


def _choose_tb(B):
    """Batch tile size.

    - B <= 256: one full-batch tile (block == full dim, so no 8-row rule,
      and splitting a tiny batch only adds per-step overhead).
    - otherwise: >= 4 grid steps (double/triple buffering + v7x dual-TC split),
      rows rounded to 128, capped at 2048 so buffered x tiles stay a few MiB.
    """
    if B <= 256:
        return B
    return min(2048, max(128, _round_up(pl.cdiv(B, 4), 128)))


def _grid_semantics(n_steps, conservative):
    """Batch-axis dimension semantics; CORE_PARALLEL on v7x when splittable."""
    core_parallel = getattr(pltpu, "CORE_PARALLEL", None)
    if conservative or core_parallel is None:
        return ("parallel",)
    kind = jax.devices()[0].device_kind.lower()
    if "7" in kind and n_steps >= 2 and n_steps % 2 == 0:
        # v7x has 2 TensorCores/chip; plain "parallel" does not reliably
        # shard the grid across them (review item 4).
        return (core_parallel,)
    return ("parallel",)


@partial(jax.jit, static_argnames=("act_dim", "out_dtype", "conservative"))
def topk_id_tri_net(x, act_dim, params, out_dtype=jnp.bfloat16,
                    conservative=False):
    """Forward pass of TopkIdTriNet.

    x: (B, C, H, W) float32, NCHW like PyTorch.
    act_dim: python int; slice is [act_dim+1 : act_dim+11] on the last dim.
    params: dict with w1 (C*H*10, HID) bf16, b1 (1, HID) f32,
            w2 (HID, D) bf16, b2 (1, D) f32.
    Returns: (B, D) `out_dtype` L2-normalized embedding (bf16 by default to
             halve the output DMA; pass out_dtype=jnp.float32 for exact
             PyTorch output dtype).
    """
    B = x.shape[0]
    w1, b1, w2, b2 = params["w1"], params["b1"], params["w2"], params["b2"]
    F_in, HID = w1.shape
    D = w2.shape[1]

    # Explicit producer: strided f32 slice read once by an XLA fusion, writing
    # a contiguous bf16 x_flat that the kernel streams with dense DMAs.
    x_embdis = x[:, :, :, act_dim + 1: act_dim + 11]            # (B, C, H, 10)
    x_flat = x_embdis.reshape(B, -1).astype(w1.dtype)           # (B, C*H*10) bf16
    assert x_flat.shape[1] == F_in

    TB = _choose_tb(B)
    n_steps = pl.cdiv(B, TB)
    grid = (n_steps,)

    # Triple-buffer the streamed x tile when there are enough steps for it to
    # matter (memory-bound kernel, short compute per step).
    x_spec_kwargs = {}
    if (not conservative) and n_steps >= 3:
        x_spec_kwargs["pipeline_mode"] = pl.Buffered(3)

    in_specs = [
        pl.BlockSpec((TB, F_in), lambda i: (i, 0), **x_spec_kwargs),  # streamed x
        pl.BlockSpec((F_in, HID), lambda i: (0, 0)),                  # resident weights
        pl.BlockSpec((1, HID), lambda i: (0, 0)),
        pl.BlockSpec((HID, D), lambda i: (0, 0)),
        pl.BlockSpec((1, D), lambda i: (0, 0)),
    ]

    out_itemsize = jnp.dtype(out_dtype).itemsize
    cost = pl.CostEstimate(
        flops=2 * B * (F_in * HID + HID * D),
        transcendentals=B,                                      # one rsqrt per row
        bytes_accessed=(x_flat.size * x_flat.dtype.itemsize     # bf16 x_flat read
                        + w1.size * w1.dtype.itemsize
                        + b1.size * b1.dtype.itemsize
                        + w2.size * w2.dtype.itemsize
                        + b2.size * b2.dtype.itemsize
                        + B * D * out_itemsize),                # bf16 output write
    )

    return pl.pallas_call(
        _embnet_kernel,
        out_shape=jax.ShapeDtypeStruct((B, D), out_dtype),
        grid_spec=pltpu.PrefetchScalarGridSpec(
            num_scalar_prefetch=0,
            grid=grid,
            in_specs=in_specs,
            out_specs=pl.BlockSpec((TB, D), lambda i: (i, 0)),
        ),
        compiler_params=pltpu.CompilerParams(
            dimension_semantics=_grid_semantics(n_steps, conservative),
            # Explicit scoped-VMEM budget (v5e default is only 16 MiB); leaves
            # headroom on v7x's 64 MiB physical VMEM.
            vmem_limit_bytes=48 << 20,
        ),
        cost_estimate=cost,
    )(x_flat, w1, b1, w2, b2)


def init_params(key, c, h, hid=32, emb=16, mxu_dtype=jnp.bfloat16):
    """Deterministic Linear-ReLU-Linear 'embdistance' parameters.

    Weights (MXU operands) are stored in bf16; biases stay f32 so all epilogue
    math is f32 (no bf16 elementwise on v5e).
    """
    f_in = c * h * 10
    k1, k2, k3, k4 = jax.random.split(key, 4)
    s1 = 1.0 / float(f_in) ** 0.5
    s2 = 1.0 / float(hid) ** 0.5
    return {
        "w1": jax.random.uniform(k1, (f_in, hid), jnp.float32, -s1, s1).astype(mxu_dtype),
        "b1": jax.random.uniform(k2, (1, hid), jnp.float32, -s1, s1),
        "w2": jax.random.uniform(k3, (hid, emb), jnp.float32, -s2, s2).astype(mxu_dtype),
        "b2": jax.random.uniform(k4, (1, emb), jnp.float32, -s2, s2),
    }


def _reference(x, act_dim, params):
    """Plain-JAX reference with the same matmul dtype strategy as the kernel."""
    B = x.shape[0]
    w1, b1, w2, b2 = params["w1"], params["b1"], params["w2"], params["b2"]
    xf = x[:, :, :, act_dim + 1: act_dim + 11].reshape(B, -1).astype(w1.dtype)
    h = jnp.maximum(jnp.dot(xf, w1, preferred_element_type=jnp.float32) + b1, 0.0)
    e = jnp.dot(h.astype(w2.dtype), w2, preferred_element_type=jnp.float32) + b2
    n = jnp.sqrt(jnp.sum(e * e, axis=1, keepdims=True))
    return e / jnp.maximum(n, 1e-12)


if __name__ == "__main__":
    key = jax.random.PRNGKey(0)
    kx, kp, kx2 = jax.random.split(key, 3)

    C, H, W = 4, 16, 16
    act_dim = 2                                  # slice [3:13], width 10 (needs W >= 13)
    params = init_params(kp, C, H, hid=32, emb=16)

    # --- small case (B=2): single full-batch tile -------------------------
    x = jax.random.normal(kx, (2, C, H, W), jnp.float32)
    emb = jax.block_until_ready(topk_id_tri_net(x, act_dim=act_dim, params=params))
    assert emb.shape == (2, 16)
    emb32 = emb.astype(jnp.float32)
    norms = jnp.sqrt(jnp.sum(emb32 * emb32, axis=1))
    assert bool(jnp.all(jnp.abs(norms - 1.0) < 1e-2)), norms
    ref = _reference(x, act_dim, params)
    assert bool(jnp.all(jnp.abs(emb32 - ref) < 1.5e-2)), \
        float(jnp.max(jnp.abs(emb32 - ref)))

    # --- larger case (B=512): 4-step pipelined grid ------------------------
    xb = jax.random.normal(kx2, (512, C, H, W), jnp.float32)
    try:
        embb = jax.block_until_ready(
            topk_id_tri_net(xb, act_dim=act_dim, params=params))
    except Exception:
        # Conservative fallback: plain "parallel" + default double buffering.
        embb = jax.block_until_ready(
            topk_id_tri_net(xb, act_dim=act_dim, params=params, conservative=True))
    refb = _reference(xb, act_dim, params)
    assert embb.shape == (512, 16)
    assert bool(jnp.all(jnp.abs(embb.astype(jnp.float32) - refb) < 1.5e-2)), \
        float(jnp.max(jnp.abs(embb.astype(jnp.float32) - refb)))

    print("KERNEL_OK")
</pallas_src>

<mosaic_0001>
module attributes {stable_mosaic.version = 11 : i64} {
  func.func @_embnet_kernel(%arg0: i32, %arg1: memref<2x640xbf16, #tpu.memory_space<vmem>>, %arg2: memref<640x32xbf16, #tpu.memory_space<vmem>>, %arg3: memref<1x32xf32, #tpu.memory_space<vmem>>, %arg4: memref<32x16xbf16, #tpu.memory_space<vmem>>, %arg5: memref<1x16xf32, #tpu.memory_space<vmem>>, %arg6: memref<2x16xbf16, #tpu.memory_space<vmem>>) attributes {dimension_semantics = [#tpu.dimension_semantics<parallel>], iteration_bounds = array<i64: 1>, scalar_prefetch = 0 : i64, scratch_operands = 0 : i64, tpu.core_type = #tpu.core_type<tc>, window_params = [{transform_indices = @transform_0, window_bounds = array<i64: 2, 640>}, {pipeline_mode = #tpu.pipeline_mode<synchronous>, transform_indices = @transform_1, window_bounds = array<i64: 640, 32>}, {pipeline_mode = #tpu.pipeline_mode<synchronous>, transform_indices = @transform_2, window_bounds = array<i64: 1, 32>}, {pipeline_mode = #tpu.pipeline_mode<synchronous>, transform_indices = @transform_3, window_bounds = array<i64: 32, 16>}, {pipeline_mode = #tpu.pipeline_mode<synchronous>, transform_indices = @transform_4, window_bounds = array<i64: 1, 16>}, {transform_indices = @transform_5, window_bounds = array<i64: 2, 16>}]} {
    %c0 = arith.constant 0 : index
    %c0_0 = arith.constant 0 : index
    %0 = vector.load %arg1[%c0, %c0_0] : memref<2x640xbf16, #tpu.memory_space<vmem>>, vector<2x640xbf16>
    %c0_1 = arith.constant 0 : index
    %c0_2 = arith.constant 0 : index
    %1 = vector.load %arg2[%c0_1, %c0_2] : memref<640x32xbf16, #tpu.memory_space<vmem>>, vector<640x32xbf16>
    %cst = arith.constant dense<0.000000e+00> : vector<2x32xf32>
    %2 = tpu.matmul %0, %1, %cst {dimension_numbers = #tpu.dot_dimension_numbers<[1], [0], [0], [1], [0, 0, 1, 1], [], []>} : vector<2x640xbf16>, vector<640x32xbf16>, vector<2x32xf32> -> vector<2x32xf32>
    %c0_3 = arith.constant 0 : index
    %c0_4 = arith.constant 0 : index
    %3 = vector.load %arg3[%c0_3, %c0_4] : memref<1x32xf32, #tpu.memory_space<vmem>>, vector<1x32xf32>
    %4 = vector.broadcast %3 : vector<1x32xf32> to vector<2x32xf32>
    %5 = arith.addf %2, %4 : vector<2x32xf32>
    %cst_5 = arith.constant 0.000000e+00 : f32
    %6 = vector.broadcast %cst_5 : f32 to vector<2x32xf32>
    %7 = arith.maximumf %5, %6 : vector<2x32xf32>
    %8 = arith.truncf %7 : vector<2x32xf32> to vector<2x32xbf16>
    %c0_6 = arith.constant 0 : index
    %c0_7 = arith.constant 0 : index
    %9 = vector.load %arg4[%c0_6, %c0_7] : memref<32x16xbf16, #tpu.memory_space<vmem>>, vector<32x16xbf16>
    %cst_8 = arith.constant dense<0.000000e+00> : vector<2x16xf32>
    %10 = tpu.matmul %8, %9, %cst_8 {dimension_numbers = #tpu.dot_dimension_numbers<[1], [0], [0], [1], [0, 0, 1, 1], [], []>} : vector<2x32xbf16>, vector<32x16xbf16>, vector<2x16xf32> -> vector<2x16xf32>
    %c0_9 = arith.constant 0 : index
    %c0_10 = arith.constant 0 : index
    %11 = vector.load %arg5[%c0_9, %c0_10] : memref<1x16xf32, #tpu.memory_space<vmem>>, vector<1x16xf32>
    %12 = vector.broadcast %11 : vector<1x16xf32> to vector<2x16xf32>
    %13 = arith.addf %10, %12 : vector<2x16xf32>
    %14 = arith.mulf %13, %13 : vector<2x16xf32>
    %cst_11 = arith.constant dense<0.000000e+00> : vector<2xf32>
    %15 = vector.multi_reduction <add>, %14, %cst_11 [1] : vector<2x16xf32> to vector<2xf32>
    %16 = vector.shape_cast %15 : vector<2xf32> to vector<2x1xf32>
    %cst_12 = arith.constant 1.000000e-24 : f32
    %17 = vector.broadcast %cst_12 : f32 to vector<2x1xf32>
    %18 = arith.maximumf %16, %17 : vector<2x1xf32>
    %19 = math.rsqrt %18 : vector<2x1xf32>
    %20 = vector.broadcast %19 : vector<2x1xf32> to vector<2x16xf32>
    %21 = arith.mulf %13, %20 : vector<2x16xf32>
    %22 = arith.truncf %21 : vector<2x16xf32> to vector<2x16xbf16>
    %c0_13 = arith.constant 0 : index
    %c0_14 = arith.constant 0 : index
    %23 = vector.load %arg6[%c0_13, %c0_14] : memref<2x16xbf16, #tpu.memory_space<vmem>>, vector<2x16xbf16>
    tpu.vector_store %arg6[%c0_13, %c0_14], %22 {strides = array<i32>} : memref<2x16xbf16, #tpu.memory_space<vmem>>, vector<2x16xbf16>,
    return
  }
  func.func @transform_0(%arg0: i32) -> (i32, i32) {
    %c0_i32 = arith.constant 0 : i32
    %c0_i32_0 = arith.constant 0 : i32
    return %arg0, %c0_i32 : i32, i32
  }
  func.func @transform_1(%arg0: i32) -> (i32, i32) {
    %c0_i32 = arith.constant 0 : i32
    %c0_i32_0 = arith.constant 0 : i32
    %c0_i32_1 = arith.constant 0 : i32
    return %c0_i32, %c0_i32_0 : i32, i32
  }
  func.func @transform_2(%arg0: i32) -> (i32, i32) {
    %c0_i32 = arith.constant 0 : i32
    %c0_i32_0 = arith.constant 0 : i32
    %c0_i32_1 = arith.constant 0 : i32
    return %c0_i32, %c0_i32_0 : i32, i32
  }
  func.func @transform_3(%arg0: i32) -> (i32, i32) {
    %c0_i32 = arith.constant 0 : i32
    %c0_i32_0 = arith.constant 0 : i32
    %c0_i32_1 = arith.constant 0 : i32
    return %c0_i32, %c0_i32_0 : i32, i32
  }
  func.func @transform_4(%arg0: i32) -> (i32, i32) {
    %c0_i32 = arith.constant 0 : i32
    %c0_i32_0 = arith.constant 0 : i32
    %c0_i32_1 = arith.constant 0 : i32
    return %c0_i32, %c0_i32_0 : i32, i32
  }
  func.func @transform_5(%arg0: i32) -> (i32, i32) {
    %c0_i32 = arith.constant 0 : i32
    %c0_i32_0 = arith.constant 0 : i32
    return %arg0, %c0_i32 : i32, i32
  }
}

</mosaic_0001>

<bundles_post_ra>
// kernel: topk_id_tri_net.1
= control target key start
LH: loop header
LB: loop body
LE: loop exit
PB: predicated region body
PF: predicated region fallthrough
CT: control target
= control target key end

     0   :  { %v115_v29 = vlaneseq  ;;  %v811_v32 = vmov 1966171168   ;;  %v812_v36 = vmov 0.0   ;;  %s992_s0 = inlined_call_operand.vmem [shape: bf16[2,640], index: 0, kind: input, shape index: {}]   ;;  %s993_s1 = inlined_call_operand.vmem [shape: bf16[640,32], index: 1, kind: input, shape index: {}]   ;;  %s994_s2 = inlined_call_operand.vmem [shape: f32[1,32], index: 2, kind: input, shape index: {}]   ;;  %s995_s3 = inlined_call_operand.vmem [shape: bf16[32,16], index: 3, kind: input, shape index: {}]   ;;  %s996_s4 = inlined_call_operand.vmem [shape: f32[1,16], index: 4, kind: input, shape index: {}]   ;;  %s997_s5 = inlined_call_operand.hbm [shape: bf16[2,16], index: 5, kind: output, shape index: {}]  }
   0x1   :  { %v742_v0 = vld [vmem:[%s993_s1 + $0x40] sm:$0xff]   ;;  %v746_v4 = vld [vmem:[%s993_s1 + $0x48] sm:$0xff]   ;;  %v750_v8 = vld [vmem:[%s993_s1 + $0x50] sm:$0xff]   ;;  %v113_v33 = vunpack.c.l.s4 %v811_v32 }
   0x2   :  { %v743_v1 = vld [vmem:[%s993_s1] sm:$0xff]   ;;  %654 = vmatprep.subr.bf16.mxu0 %v742_v0  ;;  %v747_v5 = vld [vmem:[%s993_s1 + $0x8] sm:$0xff]   ;;  %v751_v9 = vld [vmem:[%s993_s1 + $0x10] sm:$0xff]   ;;  %v116_v34 = vshrl.u32 %v115_v29, 7 }
   0x3   :  { %v744_v2 = vld [vmem:[%s993_s1 + $0xc0] sm:$0xff]   ;;  %655 = vmatpush3.bf16.msra.mxu0 %v743_v1  ;;  %v748_v6 = vld [vmem:[%s993_s1 + $0xc8] sm:$0xff]   ;;  %v752_v10 = vld [vmem:[%s993_s1 + $0xd0] sm:$0xff]   ;;  %v114_v37 = vunpack.c.0.s8 %v113_v33 }
   0x4   :  { %v745_v3 = vld [vmem:[%s993_s1 + $0x80] sm:$0xff]   ;;  %676 = vmatprep.subr.bf16.mxu1 %v744_v2  ;;  %656 = vmatprep.subr.bf16.mxu0 %v746_v4  ;;  %v749_v7 = vld [vmem:[%s993_s1 + $0x88] sm:$0xff]   ;;  %v753_v11 = vld [vmem:[%s993_s1 + $0x90] sm:$0xff]  }
   0x5   :  { %677 = vmatpush3.bf16.msra.mxu1 %v745_v3  ;;  %v754_v12 = vld [vmem:[%s993_s1 + $0x58] sm:$0xff]   ;;  %v758_v16 = vld [vmem:[%s993_s1 + $0x60] sm:$0xff]   ;;  %v762_v20 = vld [vmem:[%s993_s1 + $0x68] sm:$0xff]   ;;  %v117_v39 = vsub.s32 %v114_v37, %v116_v34 }
   0x6   :  { %678 = vmatprep.subr.bf16.mxu1 %v748_v6  ;;  %v755_v13 = vld [vmem:[%s993_s1 + $0x18] sm:$0xff]   ;;  %v759_v17 = vld [vmem:[%s993_s1 + $0x20] sm:$0xff]   ;;  %v763_v21 = vld [vmem:[%s993_s1 + $0x28] sm:$0xff]  }
   0x7   :  { %657 = vmatpush3.bf16.msra.mxu0 %v747_v5  ;;  %v756_v14 = vld [vmem:[%s993_s1 + $0xd8] sm:$0xff]   ;;  %v760_v18 = vld [vmem:[%s993_s1 + $0xe0] sm:$0xff]   ;;  %v764_v22 = vld [vmem:[%s993_s1 + $0xe8] sm:$0xff]  }
   0x8   :  { %658 = vmatprep.subr.bf16.mxu0 %v750_v8  ;;  %v757_v15 = vld [vmem:[%s993_s1 + $0x98] sm:$0xff]   ;;  %v761_v19 = vld [vmem:[%s993_s1 + $0xa0] sm:$0xff]   ;;  %v765_v23 = vld [vmem:[%s993_s1 + $0xa8] sm:$0xff]  }
   0x9   :  { %679 = vmatpush3.bf16.msra.mxu1 %v749_v7  ;;  %v766_v24 = vld [vmem:[%s993_s1 + $0x70] sm:$0xff]   ;;  %v770_v28 = vld [vmem:[%s993_s1 + $0x78] sm:$0xff]   ;;  %v22_v38 = vld [vmem:[%s992_s0] sm:$0x1f] }
   0xa   :  { %680 = vmatprep.subr.bf16.mxu1 %v752_v10  ;;  %v767_v25 = vld [vmem:[%s993_s1 + $0x30] sm:$0xff]   ;;  %v771_v30 = vld [vmem:[%s993_s1 + $0x38] sm:$0xff]   ;;  %v118_v40 = vrot.slane %v22_v38, %v117_v39  ;;  %v775_v44 = vld [vmem:[%s993_s1 + $0x100] sm:$0xff]  }
   0xb   :  { %659 = vmatpush3.bf16.msra.mxu0 %v751_v9  ;;  %v768_v26 = vld [vmem:[%s993_s1 + $0xf0] sm:$0xff]   ;;  %v772_v31 = vld [vmem:[%s993_s1 + $0xf8] sm:$0xff]  }
   0xc   :  { %660 = vmatprep.subr.bf16.mxu0 %v754_v12  ;;  %v769_v27 = vld [vmem:[%s993_s1 + $0xb0] sm:$0xff]   ;;  %v774_v35 = vld [vmem:[%s993_s1 + $0xb8] sm:$0xff]   ;;  %v126_v41 = vcombine.high %v118_v40, %v118_v40  ;;  %v133_v42 = vrot.slane %v118_v40, %v117_v39 }
   0xd   :  { %681 = vmatpush3.bf16.msra.mxu1 %v753_v11 }
   0xe   :  { %682 = vmatprep.subr.bf16.mxu1 %v756_v14  ;;  %v147_v43 = vrot.slane %v126_v41, %v117_v39 }
   0xf   :  { %661 = vmatpush3.bf16.msra.mxu0 %v755_v13 }
  0x10   :  { %662 = vmatprep.subr.bf16.mxu0 %v758_v16 }
  0x11   :  { %683 = vmatpush3.bf16.msra.mxu1 %v757_v15 }
  0x12   :  { %684 = vmatprep.subr.bf16.mxu1 %v760_v18 }
  0x13   :  { %663 = vmatpush3.bf16.msra.mxu0 %v759_v17 }
  0x14   :  { %664 = vmatprep.subr.bf16.mxu0 %v762_v20 }
  0x15   :  { %685 = vmatpush3.bf16.msra.mxu1 %v761_v19 }
  0x16   :  { %686 = vmatprep.subr.bf16.mxu1 %v764_v22 }
  0x17   :  { %665 = vmatpush3.bf16.msra.mxu0 %v763_v21 }
  0x18   :  { %666 = vmatprep.subr.bf16.mxu0 %v766_v24 }
  0x19   :  { %687 = vmatpush3.bf16.msra.mxu1 %v765_v23 }
  0x1a   :  { %688 = vmatprep.subr.bf16.mxu1 %v768_v26 }
  0x1b   :  { %667 = vmatpush3.bf16.msra.mxu0 %v767_v25 }
  0x1c   :  { %668 = vmatprep.subr.bf16.mxu0 %v770_v28 }
  0x1d   :  { %689 = vmatpush3.bf16.msra.mxu1 %v769_v27 }
  0x1e   :  { %690 = vmatprep.subr.bf16.mxu1 %v772_v31 }
  0x1f   :  { %669 = vmatpush3.bf16.msra.mxu0 %v771_v30 }
  0x20   :  { %710 = vmatprep.subr.bf16.mxu0 %v812_v36 }
  0x21   :  { %691 = vmatpush3.bf16.msra.mxu1 %v774_v35 }
  0x22   :  { %730 = vmatprep.subr.bf16.mxu1 %v812_v36 }
  0x23   :  { %10 = vsyncpa [#allocation3], 0  ;;  %v148_v45 = vcombine.high %v133_v42, %v133_v42  ;;  %427 = vmatprep.mubr.bf16.mxu0 %v147_v43  ;;  %v149_v46 = vcombine.high %v147_v43, %v147_v43  ;;  %v776_v47 = vld [vmem:[%s993_s1 + $0x108] sm:$0xff]   ;;  %vm813_vm0 = vmmov 0   ;;  %v777_v48 = vld [vmem:[%s993_s1 + $0x110] sm:$0xff]   ;;  %v111_v52 = vcombine.high %v22_v38, %v22_v38 }
  0x24   :  { %428 = vmatmul.mubr.bf16.vlgmr.msra.gmra.mrb[0].mxu0 %v133_v42  ;;  %v778_v49 = vld [vmem:[%s993_s1 + $0x118] sm:$0xff]   ;;  %v779_v50 = vld [vmem:[%s993_s1 + $0x120] sm:$0xff]   ;;  %v780_v51 = vld [vmem:[%s993_s1 + $0x128] sm:$0xff]   ;;  %vm540_vm1 = vcmask 261120   ;;  %vm585_vm2 = vcmask 123904   ;;  %vm593_vm3 = vcmask 122880  }
  0x25   :  { %467 = vmatprep.mubr.bf16.mxu1 %v149_v46  ;;  %711 = vmatpush3.bf16.msra.mxu0 %v775_v44  ;;  %v781_v53 = vld [vmem:[%s993_s1 + $0x130] sm:$0xff]   ;;  %v125_v54 = vrot.slane %v111_v52, %v117_v39  ;;  %v782_v55 = vld [vmem:[%s993_s1 + $0x138] sm:$0xff]   ;;  %v783_v57 = vld [vmem:[%s995_s3] sm:$0xff]  }
  0x26   :  { %468 = vmatmul.mubr.bf16.vlgmr.msra.gmra.mrb[0].mxu1 %v148_v45  ;;  %712 = vmatprep.subr.bf16.mxu0 %v812_v36  ;;  %v784_v58 = vld [vmem:[%s995_s3 + $0x8] sm:$0xff]   ;;  %v609_v60 = vld [vmem:[%s994_s2] ss:$0 sm:$0xff]  ;;  %s814_s3 = smov [#allocation2]  }
  0x27   :  { %726 = vmatprep.mubr.msk.bf16.mxu0 %vm813_vm0, %v812_v36  ;;  %734 = vmatprep.mubr.msk.bf16.mxu1 %vm813_vm0, %v812_v36  ;;  %v140_v56 = vrot.slane %v125_v54, %v117_v39  ;;  %v650_v15 = vld [vmem:[%s996_s4] ss:$0 sm:$0xff]  ;;  %s601_s30 = sshll.u32 %s814_s3, 4  ;;  %s602_s30 = int_to_ptr.vmem [resolvable:$true] %s601_s30 }
  0x28   :  { %731 = vmatpush3.bf16.msra.mxu1 %v783_v57  ;;  %s787_s4 = scalar_lea.vmem %s602_s30, 16  ;;  %s791_s6 = scalar_lea.vmem %s602_s30, 32 }
  0x29   :  { %713 = vmatpush3.bf16.msra.mxu0 %v776_v47  ;;  %732 = vmatprep.subr.bf16.mxu1 %v812_v36  ;;  %p788_p0 = scmp.ne.s32.totalorder %s602_s30, %s787_s4  ;;  %p792_p1 = scmp.lt.s32.totalorder %s602_s30, %s602_s30 }
  0x2a   :  { %714 = vmatprep.subr.bf16.mxu0 %v812_v36  ;;  %p793_p2 = scmp.lt.s32.totalorder %s791_s6, %s787_s4 }
  0x2c   :  { %733 = vmatpush3.bf16.msra.mxu1 %v784_v58  ;;  %p794_p3 = por %p793_p2, %p792_p1 }
  0x2d   :  { %715 = vmatpush3.bf16.msra.mxu0 %v777_v48 }
  0x2e   :  { %716 = vmatprep.subr.bf16.mxu0 %v812_v36  ;;  %p795_p4 = pnand %p794_p3, %p788_p0 }
  0x31   :  { %717 = vmatpush3.bf16.msra.mxu0 %v778_v49 }
  0x32   :  { %718 = vmatprep.subr.bf16.mxu0 %v812_v36 }
  0x35   :  { %719 = vmatpush3.bf16.msra.mxu0 %v779_v50 }
  0x36   :  { %720 = vmatprep.subr.bf16.mxu0 %v812_v36 }
  0x39   :  { %721 = vmatpush3.bf16.msra.mxu0 %v780_v51 }
  0x3a   :  { %722 = vmatprep.subr.bf16.mxu0 %v812_v36 }
  0x3d   :  { %723 = vmatpush3.bf16.msra.mxu0 %v781_v53 }
  0x3e   :  { %724 = vmatprep.subr.bf16.mxu0 %v812_v36 }
  0x41   :  { %725 = vmatpush3.bf16.msra.mxu0 %v782_v55 }
  0x44   :  { %727 = vmatmul.mubr.bf16.vlgmr.msra.gmra.mrb[4].mxu0 %v140_v56 }
  0xf7   :  { %v670_v59 = vpop.f32.mrb[0].mxu0 }
  0xf8   :  { %v671_v61 = vpop.f32.mrb[1].mxu0 }
  0xf9   :  { %v672_v62 = vadd.f32 %v671_v61, %v670_v59  ;;  %v673_v63 = vpop.f32.mrb[2].mxu0  ;;  %v692_v0 = vpop.f32.mrb[0].mxu1 }
  0xfa   :  { %v674_v1 = vpop.f32.mrb[3].mxu0  ;;  %v693_v2 = vpop.f32.mrb[1].mxu1 }
  0xfb   :  { %v430_v3 = vadd.f32 %v672_v62, %v609_v60  ;;  %v694_v4 = vadd.f32 %v693_v2, %v692_v0  ;;  %v695_v5 = vpop.f32.mrb[2].mxu1 }
  0xfc   :  { %v696_v6 = vpop.f32.mrb[3].mxu1 }
  0xfd   :  { %v470_v7 = vadd.f32 %v694_v4, %v430_v3 }
 0x117   :  { %v509_v8 = vpop.f32.mrb[4].mxu0 }
 0x118   :  { %v510_v9 = vadd.f32 %v509_v8, %v470_v7  ;;  %v728_v10 = vpop.f32.mrb[5].mxu0 }
 0x119   :  { %v512_v11 = vpop.f32.mrb[6].mxu0 }
 0x11a   :  { %v515_v12 = vmax.f32 %v510_v9, 0.0  ;;  %v729_v13 = vpop.f32.mrb[7].mxu0 }
 0x11c   :  { %v516_v14 = vpack.c.bf16 %v515_v12, %v515_v12 }
 0x11e   :  { %735 = vmatmul.mubr.msk.bf16.vlgmr.msra.gmra.mrb[4].mxu1 %vm540_vm1, %v516_v14 }
 0x1f1   :  { %v578_v16 = vpop.f32.mrb[4].mxu1 }
 0x1f2   :  { %v579_v17 = vadd.f32 %v650_v15, %v578_v16  ;;  %v736_v18 = vpop.f32.mrb[5].mxu1 }
 0x1f3   :  { %v581_v19 = vpop.f32.mrb[6].mxu1 }
 0x1f4   :  { %v737_v20 = vpop.f32.mrb[7].mxu1  ;;  %v584_v21 = vmul.f32 %v579_v17, %v579_v17 }
 0x1f6   :  { %v586_v22 = vsel %vm585_vm2, %v584_v21, 0.0 }
 0x1f7   :  { %587 = vadd.xlane.f32.xlu0 %v586_v22 }
 0x284   :  { %v588_v23 = vpop.xlane.xlu0 %587 }
 0x285   :  { %v589_v24 = vmax.f32 %v588_v23, 1e-24 }
 0x287   :  { %785 = vrsqrt.f32 %v589_v24 }
 0x291   :  { %v786_v25 = vpop.eup %785 }
 0x292   :  { %v591_v26 = vmul.f32 %v786_v25, %v579_v17 }
 0x294   :  { %v592_v27 = vpack.c.bf16 %v591_v26, %v591_v26 }
 0x296   :  { %594 = vst.msk [vmem:[#allocation2] sm:$0x1] %vm593_vm3, %v592_v27 }
 0x297   :  { %798 = shalt.err (!%p795_p4)
}
 0x298   :  { %s799_s9 = scalar_lea.hbm %s997_s5, 16 }
 0x299   :  { %p800_p5 = scmp.ne.s32.totalorder %s997_s5, %s799_s9  ;;  %p803_p6 = scmp.lt.u32.totalorder %s799_s9, %s997_s5 }
 0x29b   :  { %p805_p7 = pnand %p803_p6, %p800_p5 }
 0x29d   :  { %808 = shalt.err (!%p805_p7)
}
 0x29e   :  { %604 = dma.vmem_to_hbm [thread:$0]  %s602_s30, 16, %s997_s5, [#allocation3]  }
 0x29f   :  { %809 = dma.done.wait [#allocation3], 16  }
 0x2a0   :  { %810 = vsyncadd [#allocation3], 4294967280 }
 0x2a1   :  { %608 = vsyncpa [#allocation3], 1 }

</bundles_post_ra>
